<compile_context>
chip_gen: v7x
topology: tpu7x:2x2x1
jax: 0.10.0
libtpu: 0.0.40
codegen_flags: <defaults>
</compile_context>

<pallas_src>
import numpy as np
import jax
import jax.numpy as jnp
from jax.experimental import pallas as pl
from jax.experimental.pallas import tpu as pltpu

# ---- static problem sizes (h = w = 64 -> h/4 = 16, h/16 = 4) ----------------
H4, W4 = 16, 16            # h/4,  w/4
H16, W16 = 4, 4            # h/16, w/16
NPIX = H4 * W4             # 256 output pixels per image
NASPP = H16 * W16          # 16 ASPP pixels per image
C_DET, C_IN = 256, 48      # aspp/detail channels, in_conv output channels
C_PAD = 64                 # in_conv output zero-padded 48 -> 64 lanes
C_MID, C_OUT = 256, 128    # duo_cbr intermediate / final channels

# Tap t = dy*3+dx reads input pixel (y+dy-1, x+dx-1) == flat row q + off_t.
_TAP_OFFS = tuple((dy - 1) * W4 + (dx - 1) for dy in range(3) for dx in range(3))


# ------------------ pltpu.roll shift-convention probe (one-time) -------------
# TODO(synk): fix the roll convention statically once it is pinned down; the
# probe runs a single tiny pallas_call at prepack time (outside jit).
_ROLL_SIGN = None


def _roll_sign():
    """Returns +1 if pltpu.roll matches np.roll semantics, -1 if reversed."""
    global _ROLL_SIGN
    if _ROLL_SIGN is None:
        def probe(x_ref, o_ref):
            o_ref[...] = pltpu.roll(x_ref[...], 17, 0)

        x = np.arange(256 * 128, dtype=np.float32).reshape(256, 128)
        y = np.asarray(pl.pallas_call(
            probe, out_shape=jax.ShapeDtypeStruct((256, 128), jnp.float32),
        )(jnp.asarray(x)))
        if np.array_equal(y, np.roll(x, 17, 0)):
            _ROLL_SIGN = 1
        elif np.array_equal(y, np.roll(x, -17, 0)):
            _ROLL_SIGN = -1
        else:
            raise RuntimeError("unexpected pltpu.roll semantics")
    return _ROLL_SIGN


# -------------------- host-precomputed 3x3 border masks ----------------------
def _tap_masks_np():
    """(9, NPIX) f32 0/1: tap t of output pixel q stays inside the 16x16 image."""
    yy, xx = np.meshgrid(np.arange(H4), np.arange(W4), indexing="ij")
    yy = yy.reshape(-1)
    xx = xx.reshape(-1)
    m = np.zeros((9, NPIX), np.float32)
    for t in range(9):
        dy, dx = divmod(t, 3)
        ok = ((yy + dy - 1 >= 0) & (yy + dy - 1 < H4) &
              (xx + dx - 1 >= 0) & (xx + dx - 1 < W4))
        m[t] = ok
    return m


# ----------------------------- Pallas kernel ---------------------------------
def _make_kernel(roll_sign):
    def shift_for(off):
        # pltpu.roll amount so that tap[q] == x[(q + off) % NPIX].
        return (roll_sign * (-off)) % NPIX

    def kernel(detail_ref, aspp_ref, u_all_ref, m_det_ref, m_mid_ref,
               w_in_ref, b_in_ref, w1u_ref, w1d_ref, b1_ref, w2_ref, b2_ref,
               out_ref, buf_up, buf_det, buf_mid):

        def fill_im2col(x, mask_ref, buf_ref, c):
            # buf[:, t*c:(t+1)*c] = bf16( mask_t * x[(row + off_t) % NPIX, :] )
            # Rolls stay in f32 (native sublane layout, XLU slot); the border
            # mask is applied on the INPUT side and fused with the bf16 cast.
            for t, off in enumerate(_TAP_OFFS):
                s = shift_for(off)
                tap = pltpu.roll(x, s, 0) if s else x
                if off != 0:                      # center tap: mask == 1
                    tap = tap * mask_ref[t]
                buf_ref[:, t * c:(t + 1) * c] = tap.astype(jnp.bfloat16)

        # --- in_conv: 1x1 conv (256 -> 48, zero-padded to 64) + BN + ReLU ----
        d = jnp.dot(detail_ref[0], w_in_ref[...],
                    preferred_element_type=jnp.float32)
        d = jnp.maximum(d + b_in_ref[...], 0.0)               # (256, 64) f32

        # --- conv1, ASPP slab: x4 bilinear upsample folded into host-side
        #     interpolation matrices (contract the 16 ASPP pixels first) ------
        a = jnp.dot(aspp_ref[0], w1u_ref[...],
                    preferred_element_type=jnp.float32)       # (16, 9*256)
        a16 = a.astype(jnp.bfloat16)
        for t in range(9):                                    # (144, 256) bf16
            buf_up[t * NASPP:(t + 1) * NASPP, :] = a16[:, t * C_MID:(t + 1) * C_MID]
        h1 = jnp.dot(u_all_ref[...], buf_up[...],
                     preferred_element_type=jnp.float32)      # (256, 256) f32

        # --- conv1, detail slab: im2col scratch + one K=576 MXU dot ----------
        fill_im2col(d, m_det_ref, buf_det, C_PAD)
        h1 = h1 + jnp.dot(buf_det[...], w1d_ref[...],
                          preferred_element_type=jnp.float32)
        h1 = jnp.maximum(h1 + b1_ref[...], 0.0)               # (256, 256) f32

        # --- conv2: im2col scratch + one K=2304 MXU dot -----------------------
        fill_im2col(h1, m_mid_ref, buf_mid, C_MID)
        h2 = jnp.dot(buf_mid[...], w2_ref[...],
                     preferred_element_type=jnp.float32)
        out_ref[0] = jnp.maximum(h2 + b2_ref[...], 0.0)       # (256, 128) f32

    return kernel


# --------------------- one-time parameter / constant packing -----------------
def prepack_detail_path(params, up_mat):
    """Hoist all weight packing out of the per-call path (run once per model)."""
    masks = _tap_masks_np()                                   # (9, 256) 0/1
    up_np = np.asarray(up_mat, np.float32)                    # (256, 16)

    # U_t = diag(mask_t) . Roll_{off_t} . up_mat, packed so column (t*16 + p)
    # holds U_t[:, p] -- matches the row ordering of the in-kernel `buf_up`.
    u = np.zeros((9, NPIX, NASPP), np.float32)
    for t in range(9):
        u[t] = np.roll(up_np, -_TAP_OFFS[t], axis=0) * masks[t][:, None]
    u_all = jnp.asarray(u.transpose(1, 0, 2).reshape(NPIX, 9 * NASPP),
                        jnp.bfloat16)                         # exact in bf16 (k/64)

    pad = C_PAD - C_IN
    w_in = jnp.pad(params["w_in"], ((0, 0), (0, pad))).astype(jnp.bfloat16)
    b_in = jnp.pad(params["b_in"], ((0, 0), (0, pad)))

    # Split the 304-ch conv1 weight: the ASPP slab is re-packed (I, 3, 3, O) ->
    # (256, 9*256) for the folded-upsample path; the detail slab is zero-padded
    # 48 -> 64 and flattened to the im2col row order (t*64 + k).
    w1 = params["w1"]                                         # (3,3,304,256) HWIO
    w1_up = jnp.transpose(w1[:, :, :C_DET, :], (2, 0, 1, 3)
                          ).reshape(C_DET, 9 * C_MID).astype(jnp.bfloat16)
    w1_det = jnp.pad(w1[:, :, C_DET:, :], ((0, 0), (0, 0), (0, pad), (0, 0))
                     ).reshape(9 * C_PAD, C_MID).astype(jnp.bfloat16)
    w2 = params["w2"].reshape(9 * C_MID, C_OUT).astype(jnp.bfloat16)

    # Lane-dense masks (f32: mask math stays on the f32 taps; portable to v5e).
    m_det = jnp.asarray(np.repeat(masks[:, :, None], C_PAD, axis=2))
    m_mid = jnp.asarray(np.repeat(masks[:, :, None], C_MID, axis=2))

    return dict(roll_sign=_roll_sign(), u_all=u_all, m_det=m_det, m_mid=m_mid,
                w_in=w_in, b_in=b_in, w1_up=w1_up, w1_det=w1_det,
                b1=params["b1"], w2=w2, b2=params["b2"])


# ------------------------------- wrapper --------------------------------------
def detail_path(detail_nchw, aspp_nchw, packed):
    B = detail_nchw.shape[0]

    # NCHW -> (B, H*W, C): channels on lanes, pixels on sublanes; bf16 halves
    # the activation DMA (matmul operands are bf16, accumulation stays f32).
    detail = jnp.transpose(detail_nchw, (0, 2, 3, 1)).reshape(B, NPIX, C_DET)
    detail = detail.astype(jnp.bfloat16)
    aspp = jnp.transpose(aspp_nchw, (0, 2, 3, 1)).reshape(B, NASPP, C_DET)
    aspp = aspp.astype(jnp.bfloat16)

    def full(arr):
        return pl.BlockSpec(arr.shape, lambda b, _n=arr.ndim: (0,) * _n)

    out = pl.pallas_call(
        _make_kernel(packed["roll_sign"]),
        out_shape=jax.ShapeDtypeStruct((B, NPIX, C_OUT), jnp.float32),
        grid_spec=pltpu.PrefetchScalarGridSpec(
            num_scalar_prefetch=0,
            grid=(B,),
            in_specs=[
                pl.BlockSpec((1, NPIX, C_DET), lambda b: (b, 0, 0)),
                pl.BlockSpec((1, NASPP, C_DET), lambda b: (b, 0, 0)),
                full(packed["u_all"]),            # (256, 144) folded upsample
                full(packed["m_det"]),            # (9, 256, 64)  f32 masks
                full(packed["m_mid"]),            # (9, 256, 256) f32 masks
                full(packed["w_in"]), full(packed["b_in"]),
                full(packed["w1_up"]),            # (256, 2304)
                full(packed["w1_det"]),           # (576, 256)
                full(packed["b1"]),
                full(packed["w2"]),               # (2304, 128)
                full(packed["b2"]),
            ],
            out_specs=pl.BlockSpec((1, NPIX, C_OUT), lambda b: (b, 0, 0)),
            scratch_shapes=[
                pltpu.VMEM((9 * NASPP, C_MID), jnp.bfloat16),   # (144, 256)
                pltpu.VMEM((NPIX, 9 * C_PAD), jnp.bfloat16),    # (256, 576)
                pltpu.VMEM((NPIX, 9 * C_MID), jnp.bfloat16),    # (256, 2304)
            ]),
        compiler_params=pltpu.CompilerParams(
            dimension_semantics=("parallel",),
            vmem_limit_bytes=32 * 1024 * 1024),
    )(detail, aspp, packed["u_all"], packed["m_det"], packed["m_mid"],
      packed["w_in"], packed["b_in"], packed["w1_up"], packed["w1_det"],
      packed["b1"], packed["w2"], packed["b2"])

    return jnp.transpose(out.reshape(B, H4, W4, C_OUT), (0, 3, 1, 2))  # NCHW


# --------------------- deterministic parameter construction ------------------
def _fold_bn(w_hwio, gamma, beta, mean, var, eps=1e-5):
    """Fold inference-mode BatchNorm into the (bias-free) conv before it."""
    scale = gamma / jnp.sqrt(var + eps)          # (cout,)
    return w_hwio * scale, beta - mean * scale


def init_params(key):
    def conv_w(k, shape, fan_in):
        return jax.random.normal(k, shape, jnp.float32) / np.sqrt(fan_in)

    def bn(k, c):
        k1, k2, k3, k4 = jax.random.split(k, 4)
        gamma = 1.0 + 0.1 * jax.random.normal(k1, (c,), jnp.float32)
        beta = 0.1 * jax.random.normal(k2, (c,), jnp.float32)
        mean = 0.1 * jax.random.normal(k3, (c,), jnp.float32)
        var = jax.random.uniform(k4, (c,), jnp.float32, minval=0.5, maxval=1.5)
        return gamma, beta, mean, var

    ks = jax.random.split(key, 6)
    w_in = conv_w(ks[0], (C_DET, C_IN), C_DET)              # 1x1 conv (cin, cout)
    w_in_f, b_in_f = _fold_bn(w_in, *bn(ks[1], C_IN))
    w1 = conv_w(ks[2], (3, 3, C_DET + C_IN, C_MID), 9 * (C_DET + C_IN))  # HWIO
    w1_f, b1_f = _fold_bn(w1, *bn(ks[3], C_MID))
    w2 = conv_w(ks[4], (3, 3, C_MID, C_OUT), 9 * C_MID)     # HWIO
    w2_f, b2_f = _fold_bn(w2, *bn(ks[5], C_OUT))
    return dict(w_in=w_in_f, b_in=b_in_f.reshape(1, C_IN),
                w1=w1_f, b1=b1_f.reshape(1, C_MID),
                w2=w2_f, b2=b2_f.reshape(1, C_OUT))


def _bilinear_matrix_1d(n_in, scale):
    """PyTorch bilinear upsample (align_corners=False) as an (n_out, n_in) matrix."""
    n_out = n_in * scale
    dst = np.arange(n_out, dtype=np.float64)
    src = np.maximum((dst + 0.5) / scale - 0.5, 0.0)
    i0 = np.minimum(np.floor(src).astype(np.int64), n_in - 1)
    i1 = np.minimum(i0 + 1, n_in - 1)
    frac = src - i0
    m = np.zeros((n_out, n_in), np.float32)
    m[np.arange(n_out), i0] += (1.0 - frac)
    m[np.arange(n_out), i1] += frac
    return m


def make_up_matrix():
    mh = _bilinear_matrix_1d(H16, 4)
    mw = _bilinear_matrix_1d(W16, 4)
    return jnp.asarray(np.kron(mh, mw))          # (H4*W4, H16*W16) = (256, 16)


# ----------------------- pure-JAX reference (for checking) -------------------
def ref_forward(detail_nchw, aspp_nchw, params, up_mat):
    detail = jnp.transpose(detail_nchw, (0, 2, 3, 1))
    aspp = jnp.transpose(aspp_nchw, (0, 2, 3, 1))
    d48 = jax.nn.relu(jnp.einsum('bhwc,co->bhwo', detail, params["w_in"])
                      + params["b_in"])
    B = aspp.shape[0]
    up = jnp.einsum('oi,bic->boc', up_mat,
                    aspp.reshape(B, NASPP, C_DET)).reshape(B, H4, W4, C_DET)
    fused = jnp.concatenate([up, d48], axis=-1)

    def conv(x, w, b):
        y = jax.lax.conv_general_dilated(
            x, w, (1, 1), 'SAME', dimension_numbers=('NHWC', 'HWIO', 'NHWC'))
        return jax.nn.relu(y + b)

    h1 = conv(fused, params["w1"], params["b1"])
    h2 = conv(h1, params["w2"], params["b2"])
    return jnp.transpose(h2, (0, 3, 1, 2))


# ----------------------------------- main -------------------------------------
if __name__ == "__main__":
    key = jax.random.PRNGKey(0)
    k_det, k_aspp, k_par = jax.random.split(key, 3)
    B = 2   # even batch: both v7x TensorCores get a grid step
    # features[1]  -> detail       (b, 256, h/4,  w/4)
    # features[-1] -> aspp_feature (b, 256, h/16, w/16)
    detail_in = jax.random.normal(k_det, (B, C_DET, H4, W4), jnp.float32)
    aspp_in = jax.random.normal(k_aspp, (B, C_DET, H16, W16), jnp.float32)

    params = init_params(k_par)
    up_mat = make_up_matrix()
    packed = prepack_detail_path(params, up_mat)     # one-time weight packing

    out = jax.block_until_ready(detail_path(detail_in, aspp_in, packed))
    assert out.shape == (B, C_OUT, H4, W4), out.shape

    ref = jax.block_until_ready(ref_forward(detail_in, aspp_in, params, up_mat))
    # bf16 MXU operands (f32 accumulation) vs the f32 reference -> loosened tol.
    np.testing.assert_allclose(np.asarray(out), np.asarray(ref),
                               rtol=5e-2, atol=5e-2)
    print("KERNEL_OK")
</pallas_src>

<mosaic_0001>
module attributes {stable_mosaic.version = 11 : i64} {
  func.func @probe(%arg0: memref<256x128xf32, #tpu.memory_space<vmem>>, %arg1: memref<256x128xf32, #tpu.memory_space<vmem>>) attributes {dimension_semantics = [], scalar_prefetch = 0 : i64, scratch_operands = 0 : i64, tpu.core_type = #tpu.core_type<tc>} {
    %c0 = arith.constant 0 : index
    %c0_0 = arith.constant 0 : index
    %0 = vector.load %arg0[%c0, %c0_0] : memref<256x128xf32, #tpu.memory_space<vmem>>, vector<256x128xf32>
    %c17_i32 = arith.constant 17 : i32
    %1 = tpu.dynamic_rotate %0 by %c17_i32 dim 0 : vector<256x128xf32>, i32 -> vector<256x128xf32>
    %c0_1 = arith.constant 0 : index
    %c0_2 = arith.constant 0 : index
    %2 = vector.load %arg1[%c0_1, %c0_2] : memref<256x128xf32, #tpu.memory_space<vmem>>, vector<256x128xf32>
    tpu.vector_store %arg1[%c0_1, %c0_2], %1 {strides = array<i32>} : memref<256x128xf32, #tpu.memory_space<vmem>>, vector<256x128xf32>,
    return
  }
}

</mosaic_0001>

<bundles_post_ra>
// kernel: tpu_custom_call.1
= control target key start
LH: loop header
LB: loop body
LE: loop exit
PB: predicated region body
PF: predicated region fallthrough
CT: control target
= control target key end

     0   :  { %6 = vsyncpa [#allocation3], 0  ;;  %s341_s0 = inlined_call_operand.hbm [shape: f32[256,128], index: 0, kind: input, shape index: {}]   ;;  %s342_s1 = inlined_call_operand.hbm [shape: f32[256,128], index: 1, kind: output, shape index: {}]  }
   0x1   :  { %7 = vsyncpa [#allocation4], 0  ;;  %s223_s6 = smov [#allocation2]   ;;  %s175_s10 = scalar_lea.hbm %s341_s0, 4096 }
   0x2   :  { %s13_s7 = sshll.u32 %s223_s6, 4  ;;  %p176_p0 = scmp.ne.s32.totalorder %s341_s0, %s175_s10  ;;  %s14_s7 = int_to_ptr.vmem [resolvable:$true] %s13_s7 }
   0x3   :  { %p179_p1 = scmp.lt.u32.totalorder %s175_s10, %s341_s0 }
   0x5   :  { %p181_p2 = pnand %p179_p1, %p176_p0 }
   0x7   :  { %184 = shalt.err (!%p181_p2)
}
   0x8   :  { %s185_s15 = scalar_lea.vmem %s14_s7, 4096  ;;  %p190_p4 = scmp.lt.s32.totalorder %s14_s7, %s14_s7 }
   0x9   :  { %p186_p3 = scmp.ne.s32.totalorder %s14_s7, %s185_s15  ;;  %p191_p5 = scmp.lt.s32.totalorder %s185_s15, %s185_s15 }
   0xb   :  { %p192_p6 = por %p191_p5, %p190_p4 }
   0xd   :  { %p193_p7 = pnand %p192_p6, %p186_p3 }
   0xf   :  { %196 = shalt.err (!%p193_p7)
}
  0x10   :  { %s224_s16 = smov 128   ;;  %s225_s17 = smov 8  }
  0x11   :  { %19 = dma.hbm_to_vmem [thread:$0]  %s341_s0, 4096, %s14_s7, [#allocation3], %s224_s16, %s224_s16, %s225_s17  }
  0x12   :  { %219 = dma.done.wait [#allocation3], 4096  }
  0x13   :  { %220 = vsyncadd [#allocation3], 4294963200  ;;  %v87_v0 = vlaneseq  ;;  %v254_v2 = vld [vmem:[#allocation2 + $0xe8] sm:$0xff]  ;;  %v53_v3 = vld [vmem:[#allocation2 + $0xf0] sm:$0xff]  ;;  %s226_s0 = smov [#allocation5]  }
  0x14   :  { %v54_v4 = vld [vmem:[#allocation2 + $0xf8] sm:$0xff]  ;;  %v84_v5 = vrot.slane %v254_v2, 7  ;;  %v85_v6 = vrot.slane %v53_v3, 7  ;;  %v23_v8 = vld [vmem:[#allocation2] sm:$0xff]  ;;  %v24_v9 = vld [vmem:[#allocation2 + $0x8] sm:$0xff]  ;;  %s159_s20 = sshll.u32 %s226_s0, 4  ;;  %s160_s20 = int_to_ptr.vmem [resolvable:$true] %s159_s20 }
  0x15   :  { %v252_v1 = vshrl.u32 %v87_v0, 7  ;;  %v86_v7 = vrot.slane %v54_v4, 7  ;;  %v25_v10 = vld [vmem:[#allocation2 + $0x10] sm:$0xff]  ;;  %v55_v11 = vrot.slane %v23_v8, 7  ;;  %v56_v12 = vrot.slane %v24_v9, 7  ;;  %v26_v14 = vld [vmem:[#allocation2 + $0x18] sm:$0xff]  ;;  %p202_p9 = scmp.lt.s32.totalorder %s160_s20, %s160_s20 }
  0x16   :  { %v57_v13 = vrot.slane %v25_v10, 7  ;;  %v27_v15 = vld [vmem:[#allocation2 + $0x20] sm:$0xff]  ;;  %v28_v16 = vld [vmem:[#allocation2 + $0x28] sm:$0xff]  ;;  %v58_v19 = vrot.slane %v26_v14, 7  ;;  %v29_v21 = vld [vmem:[#allocation2 + $0x30] sm:$0xff]  ;;  %s197_s21 = scalar_lea.vmem %s160_s20, 4096 }
  0x17   :  { %vm89_vm0 = vcmp.lt.s32.totalorder %v252_v1, 1  ;;  %v59_v20 = vrot.slane %v27_v15, 7  ;;  %v30_v22 = vld [vmem:[#allocation2 + $0x38] sm:$0xff]  ;;  %v31_v23 = vld [vmem:[#allocation2 + $0x40] sm:$0xff]  ;;  %v60_v27 = vrot.slane %v28_v16, 7  ;;  %v32_v28 = vld [vmem:[#allocation2 + $0x48] sm:$0xff]  ;;  %p198_p8 = scmp.ne.s32.totalorder %s160_s20, %s197_s21  ;;  %p203_p10 = scmp.lt.s32.totalorder %s197_s21, %s197_s21 }
  0x18   :  { %v91_v17 = vsel %vm89_vm0, %v84_v5, %v85_v6  ;;  %v90_v18 = vsel %vm89_vm0, %v85_v6, %v86_v7  ;;  %v121_v24 = vsel %vm89_vm0, %v86_v7, %v55_v11  ;;  %v120_v25 = vsel %vm89_vm0, %v55_v11, %v56_v12  ;;  %v33_v29 = vld [vmem:[#allocation2 + $0x50] sm:$0xff]  ;;  %v34_v30 = vld [vmem:[#allocation2 + $0x58] sm:$0xff]  ;;  %v35_v35 = vld [vmem:[#allocation2 + $0x60] sm:$0xff] }
  0x19   :  { %122 = vst [vmem:[#allocation5] sm:$0xff] %v91_v17  ;;  %123 = vst [vmem:[#allocation5 + $0x8] sm:$0xff] %v90_v18  ;;  %v119_v26 = vsel %vm89_vm0, %v56_v12, %v57_v13  ;;  %v118_v31 = vsel %vm89_vm0, %v57_v13, %v58_v19  ;;  %v117_v32 = vsel %vm89_vm0, %v58_v19, %v59_v20  ;;  %v61_v33 = vrot.slane %v29_v21, 7  ;;  %v36_v36 = vld [vmem:[#allocation2 + $0x68] sm:$0xff]  ;;  %v37_v41 = vld [vmem:[#allocation2 + $0x70] sm:$0xff]  ;;  %p204_p11 = por %p203_p10, %p202_p9 }
  0x1a   :  { %124 = vst [vmem:[#allocation5 + $0x10] sm:$0xff] %v121_v24  ;;  %125 = vst [vmem:[#allocation5 + $0x18] sm:$0xff] %v120_v25  ;;  %v62_v34 = vrot.slane %v30_v22, 7  ;;  %v116_v37 = vsel %vm89_vm0, %v59_v20, %v60_v27  ;;  %v63_v38 = vrot.slane %v31_v23, 7  ;;  %v64_v39 = vrot.slane %v32_v28, 7  ;;  %v38_v42 = vld [vmem:[#allocation2 + $0x78] sm:$0xff] }
  0x1b   :  { %126 = vst [vmem:[#allocation5 + $0x20] sm:$0xff] %v119_v26  ;;  %127 = vst [vmem:[#allocation5 + $0x28] sm:$0xff] %v118_v31  ;;  %v65_v40 = vrot.slane %v33_v29, 7  ;;  %v115_v43 = vsel %vm89_vm0, %v60_v27, %v61_v33  ;;  %v66_v45 = vrot.slane %v34_v30, 7  ;;  %v67_v46 = vrot.slane %v35_v35, 7  ;;  %v39_v47 = vld [vmem:[#allocation2 + $0x80] sm:$0xff]  ;;  %p205_p12 = pnand %p204_p11, %p198_p8 }
  0x1c   :  { %128 = vst [vmem:[#allocation5 + $0x30] sm:$0xff] %v117_v32  ;;  %129 = vst [vmem:[#allocation5 + $0x38] sm:$0xff] %v116_v37  ;;  %v114_v44 = vsel %vm89_vm0, %v61_v33, %v62_v34  ;;  %v40_v48 = vld [vmem:[#allocation2 + $0x88] sm:$0xff]  ;;  %v41_v49 = vld [vmem:[#allocation2 + $0x90] sm:$0xff]  ;;  %v113_v50 = vsel %vm89_vm0, %v62_v34, %v63_v38  ;;  %v112_v51 = vsel %vm89_vm0, %v63_v38, %v64_v39  ;;  %v68_v53 = vrot.slane %v36_v36, 7 }
  0x1d   :  { %130 = vst [vmem:[#allocation5 + $0x40] sm:$0xff] %v115_v43  ;;  %131 = vst [vmem:[#allocation5 + $0x48] sm:$0xff] %v114_v44  ;;  %v111_v52 = vsel %vm89_vm0, %v64_v39, %v65_v40  ;;  %v42_v54 = vld [vmem:[#allocation2 + $0x98] sm:$0xff]  ;;  %v43_v55 = vld [vmem:[#allocation2 + $0xa0] sm:$0xff]  ;;  %v110_v56 = vsel %vm89_vm0, %v65_v40, %v66_v45  ;;  %v109_v57 = vsel %vm89_vm0, %v66_v45, %v67_v46  ;;  %v69_v58 = vrot.slane %v37_v41, 7 }
  0x1e   :  { %132 = vst [vmem:[#allocation5 + $0x50] sm:$0xff] %v113_v50  ;;  %133 = vst [vmem:[#allocation5 + $0x58] sm:$0xff] %v112_v51  ;;  %v70_v59 = vrot.slane %v38_v42, 7  ;;  %v44_v60 = vld [vmem:[#allocation2 + $0xa8] sm:$0xff]  ;;  %v108_v61 = vsel %vm89_vm0, %v67_v46, %v68_v53  ;;  %v71_v62 = vrot.slane %v39_v47, 7  ;;  %v72_v63 = vrot.slane %v40_v48, 7 }
  0x1f   :  { %134 = vst [vmem:[#allocation5 + $0x60] sm:$0xff] %v111_v52  ;;  %135 = vst [vmem:[#allocation5 + $0x68] sm:$0xff] %v110_v56  ;;  %v73_v0 = vrot.slane %v41_v49, 7  ;;  %v45_v3 = vld [vmem:[#allocation2 + $0xb0] sm:$0xff]  ;;  %v46_v4 = vld [vmem:[#allocation2 + $0xb8] sm:$0xff]  ;;  %v107_v6 = vsel %vm89_vm0, %v68_v53, %v69_v58  ;;  %v74_v8 = vrot.slane %v42_v54, 7 }
  0x20   :  { %136 = vst [vmem:[#allocation5 + $0x70] sm:$0xff] %v109_v57  ;;  %137 = vst [vmem:[#allocation5 + $0x78] sm:$0xff] %v108_v61  ;;  %v106_v7 = vsel %vm89_vm0, %v69_v58, %v70_v59  ;;  %v75_v9 = vrot.slane %v43_v55, 7  ;;  %v47_v10 = vld [vmem:[#allocation2 + $0xc0] sm:$0xff]  ;;  %v48_v11 = vld [vmem:[#allocation2 + $0xc8] sm:$0xff]  ;;  %v105_v13 = vsel %vm89_vm0, %v70_v59, %v71_v62  ;;  %v104_v14 = vsel %vm89_vm0, %v71_v62, %v72_v63 }
  0x21   :  { %v49_v12 = vld [vmem:[#allocation2 + $0xd0] sm:$0xff]  ;;  %138 = vst [vmem:[#allocation5 + $0x80] sm:$0xff] %v107_v6  ;;  %139 = vst [vmem:[#allocation5 + $0x88] sm:$0xff] %v106_v7  ;;  %v103_v15 = vsel %vm89_vm0, %v72_v63, %v73_v0  ;;  %v76_v16 = vrot.slane %v44_v60, 7  ;;  %v50_v17 = vld [vmem:[#allocation2 + $0xd8] sm:$0xff]  ;;  %v102_v19 = vsel %vm89_vm0, %v73_v0, %v74_v8  ;;  %v77_v21 = vrot.slane %v45_v3, 7 }
  0x22   :  { %v51_v18 = vld [vmem:[#allocation2 + $0xe0] sm:$0xff]  ;;  %140 = vst [vmem:[#allocation5 + $0x90] sm:$0xff] %v105_v13  ;;  %141 = vst [vmem:[#allocation5 + $0x98] sm:$0xff] %v104_v14  ;;  %v101_v20 = vsel %vm89_vm0, %v74_v8, %v75_v9  ;;  %v78_v22 = vrot.slane %v46_v4, 7  ;;  %v79_v24 = vrot.slane %v47_v10, 7  ;;  %v80_v25 = vrot.slane %v48_v11, 7 }
  0x23   :  { %142 = vst [vmem:[#allocation5 + $0xa0] sm:$0xff] %v103_v15  ;;  %143 = vst [vmem:[#allocation5 + $0xa8] sm:$0xff] %v102_v19  ;;  %v100_v23 = vsel %vm89_vm0, %v75_v9, %v76_v16  ;;  %v81_v26 = vrot.slane %v49_v12, 7  ;;  %v99_v27 = vsel %vm89_vm0, %v76_v16, %v77_v21  ;;  %v82_v29 = vrot.slane %v50_v17, 7 }
  0x24   :  { %144 = vst [vmem:[#allocation5 + $0xb0] sm:$0xff] %v101_v20  ;;  %145 = vst [vmem:[#allocation5 + $0xb8] sm:$0xff] %v100_v23  ;;  %v98_v28 = vsel %vm89_vm0, %v77_v21, %v78_v22  ;;  %v83_v30 = vrot.slane %v51_v18, 7  ;;  %v97_v31 = vsel %vm89_vm0, %v78_v22, %v79_v24  ;;  %v96_v32 = vsel %vm89_vm0, %v79_v24, %v80_v25 }
  0x25   :  { %146 = vst [vmem:[#allocation5 + $0xc0] sm:$0xff] %v99_v27  ;;  %147 = vst [vmem:[#allocation5 + $0xc8] sm:$0xff] %v98_v28  ;;  %v95_v33 = vsel %vm89_vm0, %v80_v25, %v81_v26  ;;  %v94_v34 = vsel %vm89_vm0, %v81_v26, %v82_v29 }
  0x26   :  { %148 = vst [vmem:[#allocation5 + $0xd0] sm:$0xff] %v97_v31  ;;  %149 = vst [vmem:[#allocation5 + $0xd8] sm:$0xff] %v96_v32  ;;  %v93_v35 = vsel %vm89_vm0, %v82_v29, %v83_v30  ;;  %v92_v36 = vsel %vm89_vm0, %v83_v30, %v84_v5 }
  0x27   :  { %150 = vst [vmem:[#allocation5 + $0xe0] sm:$0xff] %v95_v33  ;;  %151 = vst [vmem:[#allocation5 + $0xe8] sm:$0xff] %v94_v34 }
  0x28   :  { %152 = vst [vmem:[#allocation5 + $0xf0] sm:$0xff] %v93_v35  ;;  %153 = vst [vmem:[#allocation5 + $0xf8] sm:$0xff] %v92_v36 }
  0x29   :  { %208 = shalt.err (!%p205_p12)
}
  0x2a   :  { %s209_s24 = scalar_lea.hbm %s342_s1, 4096 }
  0x2b   :  { %p210_p13 = scmp.ne.s32.totalorder %s342_s1, %s209_s24  ;;  %p213_p0 = scmp.lt.u32.totalorder %s209_s24, %s342_s1 }
  0x2d   :  { %p215_p1 = pnand %p213_p0, %p210_p13 }
  0x2f   :  { %218 = shalt.err (!%p215_p1)
}
  0x30   :  { %165 = dma.vmem_to_hbm [thread:$0]  %s160_s20, 4096, %s342_s1, [#allocation4], %s224_s16, %s224_s16, %s225_s17  }
  0x31   :  { %221 = dma.done.wait [#allocation4], 4096  }
  0x32   :  { %222 = vsyncadd [#allocation4], 4294963200 }
  0x33   :  { %169 = vsyncpa [#allocation3], 1 }
  0x34   :  { %170 = vsyncpa [#allocation4], 1 }

</bundles_post_ra>
